<compile_context>
chip_gen: v7x
topology: tpu7x:2x2x1
jax: 0.10.0
libtpu: 0.0.40
codegen_flags: <defaults>
</compile_context>

<pallas_src>
import functools

import jax
import jax.numpy as jnp
from jax.experimental import pallas as pl
from jax.experimental.pallas import tpu as pltpu


def _saliency_kernel(*refs, num_heads, scale, eps, matmul_dtype, lane_dense):
    if num_heads > 1:
        (fea_ref, wq_ref, wkv_ref, wp_ref, bp_ref, gamma_ref, beta_ref,
         seg_ref, exp_ref, out_ref) = refs
    else:
        (fea_ref, wq_ref, wkv_ref, wp_ref, bp_ref, gamma_ref, beta_ref,
         out_ref) = refs
        seg_ref = exp_ref = None

    fea = fea_ref[...].astype(jnp.float32)                     # (TB, N, C)
    TB, N, C = fea.shape
    rows = TB * (N - 1)

    # ---- LayerNorm over channels, one wide VPU pass over the whole block ----
    mean = jnp.mean(fea, axis=-1, keepdims=True)
    var = jnp.mean(jnp.square(fea - mean), axis=-1, keepdims=True)
    x = (fea - mean) * jax.lax.rsqrt(var + eps)
    x = x * gamma_ref[...] + beta_ref[...]                     # (TB, N, C)

    def mx(a):  # cast MXU operands only (accumulation stays f32)
        return a if matmul_dtype is None else a.astype(matmul_dtype)

    # ---- q projection: all (batch, token) rows flattened into one MXU matmul ----
    F2 = x[:, :N - 1, :].reshape(rows, C)
    q = jnp.dot(mx(F2), mx(wq_ref[...]),
                preferred_element_type=jnp.float32)            # (rows, C)
    q = q.reshape(TB, N - 1, C)

    # ---- fused k/v projection of the stacked saliency tokens ----
    T_s = x[:, N - 1, :]                                       # (TB, C)
    kv = jnp.dot(mx(T_s), mx(wkv_ref[...]),
                 preferred_element_type=jnp.float32)           # (TB, 2C)
    k = kv[:, :C].reshape(TB, 1, C)
    v = kv[:, C:].reshape(TB, 1, C)

    # ---- single-key attention with sigmoid gating (attn_drop = identity, eval) ----
    qk = q * k                                                 # (TB, N-1, C)
    if num_heads == 1:
        score = jnp.sum(qk, axis=-1, keepdims=True) * scale    # (TB, N-1, 1)
        attn = jax.nn.sigmoid(score)
        infer = attn * v                                       # (TB, N-1, C)
    else:
        # segmented per-head reduction via a static 0/1 matrix: no lane slicing,
        # no concatenate — head order matches the PyTorch channel layout.
        score = jnp.dot(qk.reshape(rows, C), seg_ref[...],
                        preferred_element_type=jnp.float32) * scale   # (rows, H)
        attn = jax.nn.sigmoid(score)
        gate = jnp.dot(attn, exp_ref[...],
                       preferred_element_type=jnp.float32)     # (rows, C)
        infer = gate.reshape(TB, N - 1, C) * v

    # ---- output projection + bias + pre-LN residual (proj_drop = identity, eval) ----
    proj = jnp.dot(mx(infer.reshape(rows, C)), mx(wp_ref[...]),
                   preferred_element_type=jnp.float32) + bp_ref[...]   # (rows, C)
    out = proj.reshape(TB, N - 1, C) + fea[:, :N - 1, :]

    if lane_dense:
        # Present a multiple-of-128 last dim so stores are unmasked full-width vst.
        out_ref[...] = out.reshape(TB, (N - 1) * C).astype(out_ref.dtype)
    else:
        out_ref[...] = out.astype(out_ref.dtype)


def _choose_block_b(B, N, C, itemsize, vmem_budget=4 << 20):
    """Largest batch block that fits a modest VMEM budget and keeps tiling legal."""
    # input block + output block, double-buffered by the pipeline (~4x per batch row)
    per_b = max(1, N * C * itemsize * 4)
    max_tb = max(8, min(512, vmem_budget // per_b))
    if B <= max_tb:
        return B                      # single/full block: block dim equals array dim
    best = None
    for tb in range(max_tb, 0, -1):
        if B % tb:
            continue
        if tb % 8 == 0:               # 8-aligned leading dim keeps the 2D output legal
            return tb
        if best is None:
            best = tb
    # TODO(synk): for huge prime B this falls back to a divisor that forces the 3D
    # (masked-store) output path; add padding/masking to keep the lane-dense path.
    return B if best is None else best


def saliency_token_inference(fea, params, *, num_heads=1, qk_scale=None, eps=1e-5,
                             matmul_dtype=None, block_b=None):
    B, N, C = fea.shape
    assert N >= 2 and C % num_heads == 0
    head_dim = C // num_heads
    scale = float(qk_scale) if qk_scale is not None else head_dim ** (-0.5)

    itemsize = jnp.dtype(fea.dtype).itemsize
    TB = block_b if block_b is not None else _choose_block_b(B, N, C, itemsize)
    assert B % TB == 0, "batch block must divide B"
    num_blocks = B // TB
    # 2D lane-dense output only when (a) the flattened row is a multiple of 128 and
    # (b) the batch block keeps the (8,128) tiling of a 2D output legal.
    lane_dense = ((N - 1) * C) % 128 == 0 and (TB == B or TB % 8 == 0)

    # nn.Linear stores W as (out, in); pre-transpose so the kernel does x @ W^T.
    wq_t = params["wq"].T
    wkv_t = jnp.concatenate([params["wk"].T, params["wv"].T], axis=1)   # (C, 2C) fused k|v
    wp_t = params["wp"].T
    if matmul_dtype is not None:                                        # bf16 MXU operands (v6e/v7x)
        wq_t = wq_t.astype(matmul_dtype)
        wkv_t = wkv_t.astype(matmul_dtype)
        wp_t = wp_t.astype(matmul_dtype)
    bp = params["bp"].reshape(1, C).astype(jnp.float32)
    gamma = params["gamma"].reshape(1, C).astype(jnp.float32)
    beta = params["beta"].reshape(1, C).astype(jnp.float32)

    kernel = functools.partial(_saliency_kernel, num_heads=num_heads, scale=scale,
                               eps=eps, matmul_dtype=matmul_dtype, lane_dense=lane_dense)

    rows = B * (N - 1)
    w_itemsize = 2 if matmul_dtype == jnp.bfloat16 else 4
    flops = 2 * rows * C * C + 2 * B * C * (2 * C) + 2 * rows * C * C
    weight_elems = wq_t.size + wkv_t.size + wp_t.size
    if num_heads > 1:
        flops += 2 * 2 * rows * C * num_heads
        weight_elems += 2 * C * num_heads
    cost = pl.CostEstimate(
        flops=int(flops),
        transcendentals=int(B * N + rows * num_heads),
        bytes_accessed=int((B * N * C + rows * C) * itemsize
                           + weight_elems * w_itemsize
                           + (bp.size + gamma.size + beta.size) * 4),
    )

    if lane_dense:
        out_shape = jax.ShapeDtypeStruct((B, (N - 1) * C), fea.dtype)
        out_spec = pl.BlockSpec((TB, (N - 1) * C), lambda b: (b, 0))
    else:
        out_shape = jax.ShapeDtypeStruct((B, N - 1, C), fea.dtype)
        out_spec = pl.BlockSpec((TB, N - 1, C), lambda b: (b, 0, 0))

    full2d = lambda b: (0, 0)
    in_specs = [
        pl.BlockSpec((TB, N, C), lambda b: (b, 0, 0)),   # fea (TB batches per step)
        pl.BlockSpec((C, C), full2d),                    # Wq^T
        pl.BlockSpec((C, 2 * C), full2d),                # [Wk^T | Wv^T] fused
        pl.BlockSpec((C, C), full2d),                    # Wproj^T
        pl.BlockSpec((1, C), full2d),                    # proj bias
        pl.BlockSpec((1, C), full2d),                    # LayerNorm gamma
        pl.BlockSpec((1, C), full2d),                    # LayerNorm beta
    ]
    args = [fea, wq_t, wkv_t, wp_t, bp, gamma, beta]

    if num_heads > 1:
        # Static head-segment matrices (0/1), only materialized when actually used.
        head_ids = jnp.arange(C, dtype=jnp.int32) // head_dim
        seg = (head_ids[:, None] == jnp.arange(num_heads, dtype=jnp.int32)[None, :]
               ).astype(jnp.float32)                                    # (C, H)
        expand = seg.T                                                  # (H, C)
        in_specs += [pl.BlockSpec((C, num_heads), full2d),
                     pl.BlockSpec((num_heads, C), full2d)]
        args += [seg, expand]

    out = pl.pallas_call(
        kernel,
        out_shape=out_shape,
        grid=(num_blocks,),
        in_specs=in_specs,
        out_specs=out_spec,
        # Batch-block axis is parallel: with >=2 blocks both v7x TensorCores get work.
        compiler_params=pltpu.CompilerParams(dimension_semantics=("parallel",)),
        cost_estimate=cost,
    )(*args)

    return out.reshape(B, N - 1, C) if lane_dense else out


def _reference(fea, params, *, num_heads=1, qk_scale=None, eps=1e-5):
    """Pure-JAX re-implementation of the PyTorch forward (eval mode)."""
    B, N, C = fea.shape
    hd = C // num_heads
    scale = qk_scale if qk_scale is not None else hd ** (-0.5)
    mean = jnp.mean(fea, axis=-1, keepdims=True)
    var = jnp.mean((fea - mean) ** 2, axis=-1, keepdims=True)
    x = (fea - mean) / jnp.sqrt(var + eps) * params["gamma"] + params["beta"]
    T_s, F_s = x[:, -1:, :], x[:, :-1, :]
    q = (F_s @ params["wq"].T).reshape(B, N - 1, num_heads, hd).transpose(0, 2, 1, 3)
    k = (T_s @ params["wk"].T).reshape(B, 1, num_heads, hd).transpose(0, 2, 1, 3)
    v = (T_s @ params["wv"].T).reshape(B, 1, num_heads, hd).transpose(0, 2, 1, 3)
    attn = jax.nn.sigmoid((q @ jnp.swapaxes(k, -2, -1)) * scale)
    infer = (attn @ v).transpose(0, 2, 1, 3).reshape(B, N - 1, C)
    infer = infer @ params["wp"].T + params["bp"]
    return infer + fea[:, :-1, :]


if __name__ == "__main__":
    B, N, C = 2, 17, 32          # 16 spatial tokens + 1 saliency token, dim=32

    key = jax.random.PRNGKey(0)
    kf, kq, kk, kv, kp, kb = jax.random.split(key, 6)
    fea = jax.random.normal(kf, (B, N, C), dtype=jnp.float32)
    params = {
        "wq": 0.05 * jax.random.normal(kq, (C, C), dtype=jnp.float32),
        "wk": 0.05 * jax.random.normal(kk, (C, C), dtype=jnp.float32),
        "wv": 0.05 * jax.random.normal(kv, (C, C), dtype=jnp.float32),
        "wp": 0.05 * jax.random.normal(kp, (C, C), dtype=jnp.float32),
        "bp": 0.01 * jax.random.normal(kb, (C,), dtype=jnp.float32),
        "gamma": jnp.ones((C,), dtype=jnp.float32),
        "beta": jnp.zeros((C,), dtype=jnp.float32),
    }

    # num_heads=1 (module default): reduce/broadcast path.
    out1 = jax.block_until_ready(saliency_token_inference(fea, params, num_heads=1))
    ref1 = _reference(fea, params, num_heads=1)
    assert out1.shape == (B, N - 1, C)
    assert jnp.allclose(out1, ref1, atol=1e-5, rtol=1e-5), "mismatch (num_heads=1)"

    # num_heads=4: head-segment-matrix path.
    out4 = jax.block_until_ready(saliency_token_inference(fea, params, num_heads=4))
    ref4 = _reference(fea, params, num_heads=4)
    assert jnp.allclose(out4, ref4, atol=1e-5, rtol=1e-5), "mismatch (num_heads=4)"

    # Larger batch with an explicit batch block -> exercises the multi-block grid.
    B2 = 16
    fea2 = jax.random.normal(jax.random.PRNGKey(1), (B2, N, C), dtype=jnp.float32)
    out2 = jax.block_until_ready(
        saliency_token_inference(fea2, params, num_heads=2, block_b=8))
    ref2 = _reference(fea2, params, num_heads=2)
    assert jnp.allclose(out2, ref2, atol=1e-5, rtol=1e-5), "mismatch (multi-block)"

    print("KERNEL_OK")
</pallas_src>

<mosaic_0001>
module attributes {stable_mosaic.version = 11 : i64} {
  func.func @_saliency_kernel(%arg0: i32, %arg1: memref<2x17x32xf32, #tpu.memory_space<vmem>>, %arg2: memref<32x32xf32, #tpu.memory_space<vmem>>, %arg3: memref<32x64xf32, #tpu.memory_space<vmem>>, %arg4: memref<32x32xf32, #tpu.memory_space<vmem>>, %arg5: memref<1x32xf32, #tpu.memory_space<vmem>>, %arg6: memref<1x32xf32, #tpu.memory_space<vmem>>, %arg7: memref<1x32xf32, #tpu.memory_space<vmem>>, %arg8: memref<2x512xf32, #tpu.memory_space<vmem>>) attributes {dimension_semantics = [#tpu.dimension_semantics<parallel>], iteration_bounds = array<i64: 1>, scalar_prefetch = 0 : i64, scratch_operands = 0 : i64, tpu.core_type = #tpu.core_type<tc>, window_params = [{transform_indices = @transform_0, window_bounds = array<i64: 2, 17, 32>}, {pipeline_mode = #tpu.pipeline_mode<synchronous>, transform_indices = @transform_1, window_bounds = array<i64: 32, 32>}, {pipeline_mode = #tpu.pipeline_mode<synchronous>, transform_indices = @transform_2, window_bounds = array<i64: 32, 64>}, {pipeline_mode = #tpu.pipeline_mode<synchronous>, transform_indices = @transform_3, window_bounds = array<i64: 32, 32>}, {pipeline_mode = #tpu.pipeline_mode<synchronous>, transform_indices = @transform_4, window_bounds = array<i64: 1, 32>}, {pipeline_mode = #tpu.pipeline_mode<synchronous>, transform_indices = @transform_5, window_bounds = array<i64: 1, 32>}, {pipeline_mode = #tpu.pipeline_mode<synchronous>, transform_indices = @transform_6, window_bounds = array<i64: 1, 32>}, {transform_indices = @transform_7, window_bounds = array<i64: 2, 512>}]} {
    %c0 = arith.constant 0 : index
    %c0_0 = arith.constant 0 : index
    %c0_1 = arith.constant 0 : index
    %0 = vector.load %arg1[%c0, %c0_0, %c0_1] : memref<2x17x32xf32, #tpu.memory_space<vmem>>, vector<2x17x32xf32>
    %cst = arith.constant dense<0.000000e+00> : vector<2x17xf32>
    %1 = vector.multi_reduction <add>, %0, %cst [2] : vector<2x17x32xf32> to vector<2x17xf32>
    %2 = vector.shape_cast %1 : vector<2x17xf32> to vector<2x17x1xf32>
    %cst_2 = arith.constant 3.200000e+01 : f32
    %3 = vector.broadcast %cst_2 : f32 to vector<2x17x1xf32>
    %4 = arith.divf %2, %3 : vector<2x17x1xf32>
    %5 = vector.broadcast %4 : vector<2x17x1xf32> to vector<2x17x32xf32>
    %6 = arith.subf %0, %5 : vector<2x17x32xf32>
    %7 = arith.mulf %6, %6 : vector<2x17x32xf32>
    %cst_3 = arith.constant dense<0.000000e+00> : vector<2x17xf32>
    %8 = vector.multi_reduction <add>, %7, %cst_3 [2] : vector<2x17x32xf32> to vector<2x17xf32>
    %9 = vector.shape_cast %8 : vector<2x17xf32> to vector<2x17x1xf32>
    %cst_4 = arith.constant 3.200000e+01 : f32
    %10 = vector.broadcast %cst_4 : f32 to vector<2x17x1xf32>
    %11 = arith.divf %9, %10 : vector<2x17x1xf32>
    %12 = vector.broadcast %4 : vector<2x17x1xf32> to vector<2x17x32xf32>
    %13 = arith.subf %0, %12 : vector<2x17x32xf32>
    %cst_5 = arith.constant 9.99999974E-6 : f32
    %14 = vector.broadcast %cst_5 : f32 to vector<2x17x1xf32>
    %15 = arith.addf %11, %14 : vector<2x17x1xf32>
    %16 = math.rsqrt %15 : vector<2x17x1xf32>
    %17 = vector.broadcast %16 : vector<2x17x1xf32> to vector<2x17x32xf32>
    %18 = arith.mulf %13, %17 : vector<2x17x32xf32>
    %c0_6 = arith.constant 0 : index
    %c0_7 = arith.constant 0 : index
    %19 = vector.load %arg6[%c0_6, %c0_7] : memref<1x32xf32, #tpu.memory_space<vmem>>, vector<1x32xf32>
    %20 = vector.shape_cast %19 : vector<1x32xf32> to vector<1x1x32xf32>
    %21 = vector.broadcast %20 : vector<1x1x32xf32> to vector<2x17x32xf32>
    %22 = arith.mulf %18, %21 : vector<2x17x32xf32>
    %c0_8 = arith.constant 0 : index
    %c0_9 = arith.constant 0 : index
    %23 = vector.load %arg7[%c0_8, %c0_9] : memref<1x32xf32, #tpu.memory_space<vmem>>, vector<1x32xf32>
    %24 = vector.shape_cast %23 : vector<1x32xf32> to vector<1x1x32xf32>
    %25 = vector.broadcast %24 : vector<1x1x32xf32> to vector<2x17x32xf32>
    %26 = arith.addf %22, %25 : vector<2x17x32xf32>
    %27 = vector.extract_strided_slice %26 {offsets = [0, 0, 0], sizes = [2, 16, 32], strides = [1, 1, 1]} : vector<2x17x32xf32> to vector<2x16x32xf32>
    %28 = vector.shape_cast %27 : vector<2x16x32xf32> to vector<32x32xf32>
    %c0_10 = arith.constant 0 : index
    %c0_11 = arith.constant 0 : index
    %29 = vector.load %arg2[%c0_10, %c0_11] : memref<32x32xf32, #tpu.memory_space<vmem>>, vector<32x32xf32>
    %cst_12 = arith.constant dense<0.000000e+00> : vector<32x32xf32>
    %30 = tpu.matmul %28, %29, %cst_12 {dimension_numbers = #tpu.dot_dimension_numbers<[1], [0], [0], [1], [0, 0, 1, 1], [], []>} : vector<32x32xf32>, vector<32x32xf32>, vector<32x32xf32> -> vector<32x32xf32>
    %31 = vector.shape_cast %30 : vector<32x32xf32> to vector<2x16x32xf32>
    %32 = vector.extract_strided_slice %26 {offsets = [0, 16, 0], sizes = [2, 1, 32], strides = [1, 1, 1]} : vector<2x17x32xf32> to vector<2x1x32xf32>
    %33 = vector.shape_cast %32 : vector<2x1x32xf32> to vector<2x32xf32>
    %c0_13 = arith.constant 0 : index
    %c0_14 = arith.constant 0 : index
    %34 = vector.load %arg3[%c0_13, %c0_14] : memref<32x64xf32, #tpu.memory_space<vmem>>, vector<32x64xf32>
    %cst_15 = arith.constant dense<0.000000e+00> : vector<2x64xf32>
    %35 = tpu.matmul %33, %34, %cst_15 {dimension_numbers = #tpu.dot_dimension_numbers<[1], [0], [0], [1], [0, 0, 1, 1], [], []>} : vector<2x32xf32>, vector<32x64xf32>, vector<2x64xf32> -> vector<2x64xf32>
    %36 = vector.extract_strided_slice %35 {offsets = [0, 0], sizes = [2, 32], strides = [1, 1]} : vector<2x64xf32> to vector<2x32xf32>
    %37 = vector.shape_cast %36 : vector<2x32xf32> to vector<2x1x32xf32>
    %38 = vector.extract_strided_slice %35 {offsets = [0, 32], sizes = [2, 32], strides = [1, 1]} : vector<2x64xf32> to vector<2x32xf32>
    %39 = vector.shape_cast %38 : vector<2x32xf32> to vector<2x1x32xf32>
    %40 = vector.broadcast %37 : vector<2x1x32xf32> to vector<2x16x32xf32>
    %41 = arith.mulf %31, %40 : vector<2x16x32xf32>
    %cst_16 = arith.constant dense<0.000000e+00> : vector<2x16xf32>
    %42 = vector.multi_reduction <add>, %41, %cst_16 [2] : vector<2x16x32xf32> to vector<2x16xf32>
    %43 = vector.shape_cast %42 : vector<2x16xf32> to vector<2x16x1xf32>
    %cst_17 = arith.constant 0.176776692 : f32
    %44 = vector.broadcast %cst_17 : f32 to vector<2x16x1xf32>
    %45 = arith.mulf %43, %44 : vector<2x16x1xf32>
    %46 = arith.negf %45 : vector<2x16x1xf32>
    %47 = math.exp %46 : vector<2x16x1xf32>
    %cst_18 = arith.constant 1.000000e+00 : f32
    %48 = vector.broadcast %cst_18 : f32 to vector<2x16x1xf32>
    %49 = arith.addf %48, %47 : vector<2x16x1xf32>
    %50 = arith.divf %48, %49 : vector<2x16x1xf32>
    %51 = vector.broadcast %50 : vector<2x16x1xf32> to vector<2x16x32xf32>
    %52 = vector.broadcast %39 : vector<2x1x32xf32> to vector<2x16x32xf32>
    %53 = arith.mulf %51, %52 : vector<2x16x32xf32>
    %54 = vector.shape_cast %53 : vector<2x16x32xf32> to vector<32x32xf32>
    %c0_19 = arith.constant 0 : index
    %c0_20 = arith.constant 0 : index
    %55 = vector.load %arg4[%c0_19, %c0_20] : memref<32x32xf32, #tpu.memory_space<vmem>>, vector<32x32xf32>
    %cst_21 = arith.constant dense<0.000000e+00> : vector<32x32xf32>
    %56 = tpu.matmul %54, %55, %cst_21 {dimension_numbers = #tpu.dot_dimension_numbers<[1], [0], [0], [1], [0, 0, 1, 1], [], []>} : vector<32x32xf32>, vector<32x32xf32>, vector<32x32xf32> -> vector<32x32xf32>
    %c0_22 = arith.constant 0 : index
    %c0_23 = arith.constant 0 : index
    %57 = vector.load %arg5[%c0_22, %c0_23] : memref<1x32xf32, #tpu.memory_space<vmem>>, vector<1x32xf32>
    %58 = vector.broadcast %57 : vector<1x32xf32> to vector<32x32xf32>
    %59 = arith.addf %56, %58 : vector<32x32xf32>
    %60 = vector.shape_cast %59 : vector<32x32xf32> to vector<2x16x32xf32>
    %61 = vector.extract_strided_slice %0 {offsets = [0, 0, 0], sizes = [2, 16, 32], strides = [1, 1, 1]} : vector<2x17x32xf32> to vector<2x16x32xf32>
    %62 = arith.addf %60, %61 : vector<2x16x32xf32>
    %63 = vector.shape_cast %62 : vector<2x16x32xf32> to vector<2x512xf32>
    %c0_24 = arith.constant 0 : index
    %c0_25 = arith.constant 0 : index
    %64 = vector.load %arg8[%c0_24, %c0_25] : memref<2x512xf32, #tpu.memory_space<vmem>>, vector<2x512xf32>
    tpu.vector_store %arg8[%c0_24, %c0_25], %63 {strides = array<i32>} : memref<2x512xf32, #tpu.memory_space<vmem>>, vector<2x512xf32>,
    return
  }
  func.func @transform_0(%arg0: i32) -> (i32, i32, i32) {
    %c0_i32 = arith.constant 0 : i32
    %c0_i32_0 = arith.constant 0 : i32
    %c0_i32_1 = arith.constant 0 : i32
    return %arg0, %c0_i32, %c0_i32_0 : i32, i32, i32
  }
  func.func @transform_1(%arg0: i32) -> (i32, i32) {
    %c0_i32 = arith.constant 0 : i32
    %c0_i32_0 = arith.constant 0 : i32
    %c0_i32_1 = arith.constant 0 : i32
    return %c0_i32, %c0_i32_0 : i32, i32
  }
  func.func @transform_2(%arg0: i32) -> (i32, i32) {
    %c0_i32 = arith.constant 0 : i32
    %c0_i32_0 = arith.constant 0 : i32
    %c0_i32_1 = arith.constant 0 : i32
    return %c0_i32, %c0_i32_0 : i32, i32
  }
  func.func @transform_3(%arg0: i32) -> (i32, i32) {
    %c0_i32 = arith.constant 0 : i32
    %c0_i32_0 = arith.constant 0 : i32
    %c0_i32_1 = arith.constant 0 : i32
    return %c0_i32, %c0_i32_0 : i32, i32
  }
  func.func @transform_4(%arg0: i32) -> (i32, i32) {
    %c0_i32 = arith.constant 0 : i32
    %c0_i32_0 = arith.constant 0 : i32
    %c0_i32_1 = arith.constant 0 : i32
    return %c0_i32, %c0_i32_0 : i32, i32
  }
  func.func @transform_5(%arg0: i32) -> (i32, i32) {
    %c0_i32 = arith.constant 0 : i32
    %c0_i32_0 = arith.constant 0 : i32
    %c0_i32_1 = arith.constant 0 : i32
    return %c0_i32, %c0_i32_0 : i32, i32
  }
  func.func @transform_6(%arg0: i32) -> (i32, i32) {
    %c0_i32 = arith.constant 0 : i32
    %c0_i32_0 = arith.constant 0 : i32
    %c0_i32_1 = arith.constant 0 : i32
    return %c0_i32, %c0_i32_0 : i32, i32
  }
  func.func @transform_7(%arg0: i32) -> (i32, i32) {
    %c0_i32 = arith.constant 0 : i32
    %c0_i32_0 = arith.constant 0 : i32
    return %arg0, %c0_i32 : i32, i32
  }
}

</mosaic_0001>

<bundles_post_ra>
// kernel: tpu_custom_call.1
= control target key start
LH: loop header
LB: loop body
LE: loop exit
PB: predicated region body
PF: predicated region fallthrough
CT: control target
= control target key end

     0   :  { %12 = vsyncpa [#allocation3], 0  ;;  %s1202_s0 = inlined_call_operand.vmem [shape: f32[2,17,32], index: 0, kind: input, shape index: {}]   ;;  %s1203_s1 = inlined_call_operand.vmem [shape: f32[32,32], index: 1, kind: input, shape index: {}]   ;;  %s1204_s2 = inlined_call_operand.vmem [shape: f32[32,64], index: 2, kind: input, shape index: {}]   ;;  %s1205_s3 = inlined_call_operand.hbm [shape: f32[32,32], index: 3, kind: input, shape index: {}]   ;;  %s1206_s4 = inlined_call_operand.vmem [shape: f32[1,32], index: 4, kind: input, shape index: {}]   ;;  %s1207_s5 = inlined_call_operand.vmem [shape: f32[1,32], index: 5, kind: input, shape index: {}]   ;;  %s1208_s6 = inlined_call_operand.vmem [shape: f32[1,32], index: 6, kind: input, shape index: {}]   ;;  %s1209_s7 = inlined_call_operand.hbm [shape: f32[2,512], index: 7, kind: output, shape index: {}]  }
   0x1   :  { %13 = vsyncpa [#allocation4], 0  ;;  %s956_s24 = smov [#allocation2]   ;;  %s908_s28 = scalar_lea.hbm %s1205_s3, 512 }
   0x2   :  { %s25_s25 = sshll.u32 %s956_s24, 4  ;;  %p909_p0 = scmp.ne.s32.totalorder %s1205_s3, %s908_s28  ;;  %s26_s25 = int_to_ptr.vmem [resolvable:$true] %s25_s25 }
   0x3   :  { %p912_p1 = scmp.lt.u32.totalorder %s908_s28, %s1205_s3 }
   0x5   :  { %p914_p2 = pnand %p912_p1, %p909_p0 }
   0x7   :  { %917 = shalt.err (!%p914_p2)
}
   0x8   :  { %s918_s10 = scalar_lea.vmem %s26_s25, 512  ;;  %p923_p4 = scmp.lt.s32.totalorder %s26_s25, %s26_s25 }
   0x9   :  { %p919_p3 = scmp.ne.s32.totalorder %s26_s25, %s918_s10  ;;  %p924_p5 = scmp.lt.s32.totalorder %s918_s10, %s918_s10 }
   0xb   :  { %p925_p6 = por %p924_p5, %p923_p4 }
   0xd   :  { %p926_p7 = pnand %p925_p6, %p919_p3 }
   0xf   :  { %929 = shalt.err (!%p926_p7)
}
  0x10   :  { %s957_s11 = smov 128   ;;  %s958_s12 = smov 8  }
  0x11   :  { %31 = dma.hbm_to_vmem [thread:$0]  %s1205_s3, 512, %s26_s25, [#allocation3], %s957_s11, %s957_s11, %s958_s12  }
  0x12   :  { %952 = dma.done.wait [#allocation3], 512  }
  0x13   :  { %953 = vsyncadd [#allocation3], 4294966784  ;;  %vm47_vm0 = vcmask 261120   ;;  %v1024_v0 = vld [vmem:[%s1202_s0] sm:$0xff]  ;;  %v1029_v1 = vld [vmem:[%s1202_s0 + $0x18] sm:$0xff]  ;;  %vm54_vm1 = vcmask 253952  }
  0x14   :  { %v1034_v2 = vld [vmem:[%s1202_s0 + $0x8] sm:$0xff]  ;;  %v48_v3 = vsel %vm47_vm0, %v1024_v0, 0.0  ;;  %v58_v4 = vsel %vm47_vm0, %v1029_v1, 0.0  ;;  %v1043_v5 = vld [vmem:[%s1202_s0 + $0x20] sm:$0xff]  ;;  %v43_v9 = vld [vmem:[%s1202_s0 + $0x10] sm:$0x1] }
  0x15   :  { %49 = vadd.xlane.f32.xlu0 %v48_v3  ;;  %59 = vadd.xlane.f32.xlu1 %v58_v4  ;;  %v51_v6 = vsel %vm47_vm0, %v1034_v2, 0.0  ;;  %v61_v7 = vsel %vm47_vm0, %v1043_v5, 0.0  ;;  %v46_v8 = vld [vmem:[%s1202_s0 + $0x28] sm:$0x1]  ;;  %v55_v11 = vsel %vm54_vm1, %v43_v9, 0.0  ;;  %v154_v42 = vld [vmem:[%s1203_s1] sm:$0xff] }
  0x16   :  { %v64_v10 = vsel %vm54_vm1, %v46_v8, 0.0  ;;  %v155_v43 = vld [vmem:[%s1203_s1 + $0x8] sm:$0xff]  ;;  %v156_v45 = vld [vmem:[%s1203_s1 + $0x10] sm:$0xff]  ;;  %v157_v46 = vld [vmem:[%s1203_s1 + $0x18] sm:$0xff]  ;;  %v959_v48 = vmov 0.0|0.0   ;;  %vm960_vm2 = vmmov 0  }
  0x17   :  { %v845_v44 = vpack.c.bf16 %v155_v43, %v154_v42  ;;  %v849_v47 = vpack.c.bf16 %v157_v46, %v156_v45  ;;  %vm262_vm3 = vcmask 1041409   ;;  %v962_v43 = vmov 1966171168   ;;  %s967_s3 = smov 32   ;;  %s968_s21 = smov [#allocation5]  }
  0x18   :  { %vm718_vm4 = vcmask 523264   ;;  %vm720_vm5 = vcmask 785408   ;;  %s760_s22 = sshll.u32 %s968_s21, 4  ;;  %s761_s22 = int_to_ptr.vmem [resolvable:$true] %s760_s22 }
  0x19   :  { %52 = vadd.xlane.f32.xlu0 %v51_v6  ;;  %62 = vadd.xlane.f32.xlu1 %v61_v7  ;;  %s930_s23 = scalar_lea.vmem %s761_s22, 128  ;;  %p935_p9 = scmp.lt.s32.totalorder %s761_s22, %s761_s22 }
  0x1a   :  { %846 = vmatprep.subr.bf16.mxu1 %v845_v44  ;;  %p931_p8 = scmp.ne.s32.totalorder %s761_s22, %s930_s23  ;;  %p936_p10 = scmp.lt.s32.totalorder %s930_s23, %s930_s23 }
  0x1b   :  { %848 = vmatpush3.bf16.msra.mxu1 %v845_v44  ;;  %v338_v44 = vunpack.c.l.s4 %v962_v43 }
  0x1c   :  { %850 = vmatprep.subr.bf16.mxu1 %v849_v47  ;;  %p937_p11 = por %p936_p10, %p935_p9 }
  0x1d   :  { %65 = vadd.xlane.f32.xlu0 %v64_v10  ;;  %56 = vadd.xlane.f32.xlu1 %v55_v11  ;;  %v770_v10 = vld [vmem:[%s1208_s6] ss:$0 sm:$0xff] }
  0x1e   :  { %p938_p12 = pnand %p937_p11, %p931_p8 }
  0x1f   :  { %852 = vmatpush3.bf16.msra.mxu1 %v849_v47  ;;  %v339_v47 = vunpack.c.0.s8 %v338_v44 }
  0x20   :  { %853 = vmatprep.subr.bf16.mxu1 %v959_v48 }
  0xa2   :  { %v50_v12 = vpop.xlane.xlu0 %49  ;;  %v60_v13 = vpop.xlane.xlu1 %59 }
  0xa3   :  { %v68_v14 = vmul.f32 0.03125, %v50_v12  ;;  %v71_v15 = vmul.f32 0.03125, %v60_v13 }
  0xa5   :  { %v1058_v16 = vsub.f32 %v1024_v0, %v68_v14  ;;  %v1061_v17 = vsub.f32 %v1029_v1, %v71_v15 }
  0xa6   :  { %v53_v18 = vpop.xlane.xlu0 %52  ;;  %v63_v19 = vpop.xlane.xlu1 %62 }
  0xa7   :  { %v69_v20 = vmul.f32 0.03125, %v53_v18  ;;  %v72_v21 = vmul.f32 0.03125, %v63_v19  ;;  %v80_v22 = vmul.f32 %v1058_v16, %v1058_v16  ;;  %v83_v23 = vmul.f32 %v1061_v17, %v1061_v17  ;;  %v255_v18 = vld [vmem:[%s1204_s2] sm:$0xff]  ;;  %v256_v19 = vld [vmem:[%s1204_s2 + $0x8] sm:$0xff] }
  0xa9   :  { %v1068_v24 = vsub.f32 %v1034_v2, %v69_v20  ;;  %v1071_v25 = vsub.f32 %v1043_v5, %v72_v21  ;;  %v86_v26 = vsel %vm47_vm0, %v80_v22, 0.0  ;;  %v95_v29 = vsel %vm47_vm0, %v83_v23, 0.0 }
  0xaa   :  { %87 = vadd.xlane.f32.xlu0 %v86_v26  ;;  %v66_v27 = vpop.xlane.xlu0 %65  ;;  %v57_v28 = vpop.xlane.xlu1 %56  ;;  %v854_v23 = vpack.c.bf16 %v256_v19, %v255_v18 }
  0xab   :  { %v73_v30 = vmul.f32 0.03125, %v66_v27  ;;  %v70_v31 = vmul.f32 0.03125, %v57_v28  ;;  %v81_v32 = vmul.f32 %v1068_v24, %v1068_v24  ;;  %v84_v33 = vmul.f32 %v1071_v25, %v1071_v25  ;;  %v257_v28 = vld [vmem:[%s1204_s2 + $0x10] sm:$0xff] }
  0xad   :  { %v1079_v34 = vsub.f32 %v46_v8, %v73_v30  ;;  %v1081_v35 = vsub.f32 %v43_v9, %v70_v31  ;;  %v89_v36 = vsel %vm47_vm0, %v81_v32, 0.0  ;;  %v98_v37 = vsel %vm47_vm0, %v84_v33, 0.0  ;;  %v769_v8 = vld [vmem:[%s1207_s5] ss:$0 sm:$0xff] }
  0xae   :  { %96 = vadd.xlane.f32.xlu0 %v95_v29  ;;  %90 = vadd.xlane.f32.xlu1 %v89_v36  ;;  %v258_v29 = vld [vmem:[%s1204_s2 + $0x18] sm:$0xff]  ;;  %s963_s2 = smov 96  }
  0xaf   :  { %v85_v38 = vmul.f32 %v1079_v34, %v1079_v34  ;;  %v82_v39 = vmul.f32 %v1081_v35, %v1081_v35  ;;  %v857_v33 = vpack.c.bf16 %v258_v29, %v257_v28 }
  0xb1   :  { %v101_v40 = vsel %vm54_vm1, %v85_v38, 0.0  ;;  %v92_v41 = vsel %vm54_vm1, %v82_v39, 0.0 }
  0xb2   :  { %99 = vadd.xlane.f32.xlu1 %v98_v37  ;;  %102 = vadd.xlane.f32.xlu0 %v101_v40 }
  0xb6   :  { %93 = vadd.xlane.f32.xlu1 %v92_v41 }
 0x137   :  { %v88_v49 = vpop.xlane.xlu0 %87 }
 0x138   :  { %v104_v50 = vmul.f32 0.03125, %v88_v49 }
 0x13a   :  { %v110_v51 = vadd.f32 1e-05, %v104_v50 }
 0x13b   :  { %v91_v52 = vpop.xlane.xlu1 %90  ;;  %v97_v53 = vpop.xlane.xlu0 %96 }
 0x13c   :  { %880 = vrsqrt.f32 %v110_v51  ;;  %v105_v54 = vmul.f32 0.03125, %v91_v52  ;;  %v107_v55 = vmul.f32 0.03125, %v97_v53 }
 0x13e   :  { %v111_v56 = vadd.f32 1e-05, %v105_v54  ;;  %v113_v57 = vadd.f32 1e-05, %v107_v55 }
 0x13f   :  { %v100_v58 = vpop.xlane.xlu1 %99  ;;  %v103_v59 = vpop.xlane.xlu0 %102 }
 0x140   :  { %882 = vrsqrt.f32 %v111_v56  ;;  %v108_v60 = vmul.f32 0.03125, %v100_v58  ;;  %v109_v61 = vmul.f32 0.03125, %v103_v59 }
 0x141   :  { %884 = vrsqrt.f32 %v113_v57 }
 0x142   :  { %v114_v62 = vadd.f32 1e-05, %v108_v60  ;;  %v115_v63 = vadd.f32 1e-05, %v109_v61 }
 0x143   :  { %v94_v3 = vpop.xlane.xlu1 %93 }
 0x144   :  { %886 = vrsqrt.f32 %v114_v62  ;;  %v106_v4 = vmul.f32 0.03125, %v94_v3 }
 0x145   :  { %888 = vrsqrt.f32 %v115_v63 }
 0x146   :  { %v881_v6 = vpop.eup %880  ;;  %v112_v7 = vadd.f32 1e-05, %v106_v4 }
 0x147   :  { %v122_v9 = vmul.f32 %v881_v6, %v1058_v16 }
 0x148   :  { %890 = vrsqrt.f32 %v112_v7 }
 0x149   :  { %v135_v11 = vmul.f32 %v769_v8, %v122_v9  ;;  %v417_v9 = vld [vmem:[#allocation2] sm:$0xff] }
 0x14a   :  { %v883_v12 = vpop.eup %882 }
 0x14b   :  { %v885_v13 = vpop.eup %884  ;;  %v148_v14 = vadd.f32 %v770_v10, %v135_v11  ;;  %v123_v15 = vmul.f32 %v883_v12, %v1068_v24  ;;  %v419_v11 = vld [vmem:[#allocation2 + $0x10] sm:$0xff] }
 0x14c   :  { %v125_v16 = vmul.f32 %v885_v13, %v1061_v17  ;;  %v420_v13 = vld [vmem:[#allocation2 + $0x18] sm:$0xff] }
 0x14d   :  { %814 = vmatprep.mubr.msk.f32.mxu1 %vm47_vm0, %v148_v14  ;;  %v136_v20 = vmul.f32 %v769_v8, %v123_v15  ;;  %v863_v14 = vpack.c.bf16 %v420_v13, %v419_v11 }
 0x14e   :  { %v887_v21 = vpop.eup %886  ;;  %v138_v22 = vmul.f32 %v769_v8, %v125_v16 }
 0x14f   :  { %v889_v26 = vpop.eup %888  ;;  %v149_v27 = vadd.f32 %v770_v10, %v136_v20  ;;  %v126_v24 = vmul.f32 %v887_v21, %v1071_v25 }
 0x150   :  { %v127_v17 = vmul.f32 %v889_v26, %v1079_v34  ;;  %v151_v30 = vadd.f32 %v770_v10, %v138_v22  ;;  %v961_v34 = vmov 0.0  }
 0x151   :  { %815 = vmatmul.mubr.msk.f32.vlgmr.msra.gmra.mrb[0].mxu1 %vm47_vm0, %v149_v27  ;;  %v139_v31 = vmul.f32 %v769_v8, %v126_v24 }
 0x152   :  { %v891_v32 = vpop.eup %890  ;;  %817 = vmatprep.mubr.msk.f32.mxu1 %vm47_vm0, %v151_v30  ;;  %855 = vmatpush3.bf16.msra.mxu1 %v854_v23  ;;  %v140_v25 = vmul.f32 %v769_v8, %v127_v17 }
 0x153   :  { %v124_v36 = vmul.f32 %v891_v32, %v1081_v35  ;;  %v152_v37 = vadd.f32 %v770_v10, %v139_v31  ;;  %856 = vmatprep.subr.bf16.mxu1 %v959_v48  ;;  %v340_v35 = vlaneseq }
 0x154   :  { %v153_v38 = vadd.f32 %v770_v10, %v140_v25 }
 0x155   :  { %818 = vmatmul.mubr.msk.f32.gmra.mrb[2].mxu1 %vm47_vm0, %v152_v37  ;;  %v137_v39 = vmul.f32 %v769_v8, %v124_v36  ;;  %v1133_v48 = vshrl.u32 %v340_v35, 7 }
 0x156   :  { %858 = vmatpush3.bf16.msra.mxu1 %v857_v33  ;;  %828 = vmatprep.mubr.msk.f32.mxu1 %vm960_vm2, %v961_v34  ;;  %v261_v41 = vrot.slane %v153_v38, 7 }
 0x157   :  { %v150_v40 = vadd.f32 %v770_v10, %v137_v39  ;;  %v342_v51 = vsub.s32 %v339_v47, %v1133_v48  ;;  %v361_v54 = vsub.s32 0, %v1133_v48  ;;  %v418_v10 = vld [vmem:[#allocation2 + $0x8] sm:$0xff] }
 0x158   :  { %v859_v12 = vpack.c.bf16 %v418_v10, %v417_v9 }
 0x159   :  { %v263_v42 = vsel %vm262_vm3, %v261_v41, %v150_v40 }
 0x15a   :  { %829 = vmatmul.mubr.msk.f32.vlgmr.msra.gmra.mrb[4].mxu1 %vm47_vm0, %v263_v42  ;;  %860 = vmatprep.subr.bf16.mxu0 %v859_v12 }
 0x15b   :  { %862 = vmatpush3.bf16.msra.mxu0 %v859_v12 }
 0x15c   :  { %864 = vmatprep.subr.bf16.mxu0 %v863_v14 }
 0x15f   :  { %866 = vmatpush3.bf16.msra.mxu0 %v863_v14 }
 0x224   :  { %v816_v45 = vpop.f32.mrb[0].mxu1 }
 0x225   :  { %v236_v46 = vpop.f32.mrb[1].mxu1 }
 0x228   :  { %v819_v49 = vpop.f32.mrb[2].mxu1 }
 0x229   :  { %v246_v50 = vpop.f32.mrb[3].mxu1 }
 0x22d   :  { %v332_v52 = vpop.f32.mrb[4].mxu1 }
 0x22e   :  { %v343_v53 = vrot.slane %v332_v52, %v342_v51  ;;  %v830_v55 = vpop.f32.mrb[5].mxu1 }
 0x230   :  { %v344_v56 = vcombine.high %v343_v53, %v343_v53  ;;  %v351_v57 = vrot.slane %v343_v53, %v342_v51 }
 0x232   :  { %v358_v58 = vrot.slane %v344_v56, %v342_v51  ;;  %v362_v59 = vrot.slane %v351_v57, %v361_v54  ;;  %v965_v57 = vmov 1934713408  }
 0x234   :  { %v366_v60 = vrot.slane %v358_v58, %v361_v54  ;;  %v370_v61 = vmul.f32 %v816_v45, %v362_v59  ;;  %v369_v62 = vmul.f32 %v362_v59, %v236_v46  ;;  %v570_v58 = vunpack.c.l.s4 %v965_v57 }
 0x236   :  { %v376_v63 = vsel %vm47_vm0, %v370_v61, 0.0  ;;  %v373_v3 = vsel %vm47_vm0, %v369_v62, 0.0  ;;  %v372_v4 = vmul.f32 %v819_v49, %v366_v60  ;;  %v371_v6 = vmul.f32 %v366_v60, %v246_v50  ;;  %v780_v49 = vld [vmem:[%s1206_s4] ss:$0 sm:$0xff]  ;;  %s966_s4 = smov 64  }
 0x237   :  { %377 = vadd.xlane.f32.xlu1 %v376_v63  ;;  %374 = vadd.xlane.f32.xlu0 %v373_v3  ;;  %v964_v50 = vmov 1983009808   ;;  %v571_v63 = vunpack.c.0.s8 %v570_v58 }
 0x238   :  { %v382_v7 = vsel %vm47_vm0, %v372_v4, 0.0  ;;  %v379_v8 = vsel %vm47_vm0, %v371_v6, 0.0  ;;  %v539_v51 = vunpack.c.l.s4 %v964_v50 }
 0x23a   :  { %v540_v56 = vunpack.c.0.s8 %v539_v51 }
 0x23b   :  { %383 = vadd.xlane.f32.xlu1 %v382_v7  ;;  %380 = vadd.xlane.f32.xlu0 %v379_v8 }
 0x23c   :  { %v1155_v62 = vsub.s32 %v540_v56, %v1133_v48 }
 0x2c4   :  { %v378_v15 = vpop.xlane.xlu1 %377  ;;  %v375_v18 = vpop.xlane.xlu0 %374 }
 0x2c5   :  { %v777_v19 = vmul.f32 -0.17677669, %v378_v15  ;;  %v776_v16 = vmul.f32 -0.17677669, %v375_v18 }
 0x2c7   :  { %v395_v20 = vmul.f32 1.442695, %v777_v19  ;;  %v393_v21 = vmul.f32 1.442695, %v776_v16 }
 0x2c8   :  { %v384_v22 = vpop.xlane.xlu1 %383  ;;  %v381_v23 = vpop.xlane.xlu0 %380 }
 0x2c9   :  { %892 = vpow2.f32 %v395_v20  ;;  %v779_v26 = vmul.f32 -0.17677669, %v384_v22  ;;  %v778_v27 = vmul.f32 -0.17677669, %v381_v23 }
 0x2ca   :  { %894 = vpow2.f32 %v393_v21 }
 0x2cb   :  { %v399_v24 = vmul.f32 1.442695, %v779_v26  ;;  %v397_v28 = vmul.f32 1.442695, %v778_v27 }
 0x2cd   :  { %896 = vpow2.f32 %v399_v24 }
 0x2ce   :  { %898 = vpow2.f32 %v397_v28 }
 0x2d3   :  { %v893_v29 = vpop.eup %892 }
 0x2d4   :  { %v895_v17 = vpop.eup %894  ;;  %v402_v30 = vadd.f32 1.0, %v893_v29 }
 0x2d5   :  { %v401_v31 = vadd.f32 1.0, %v895_v17 }
 0x2d6   :  { %900 = vrcp.f32 %v402_v30 }
 0x2d7   :  { %v897_v32 = vpop.eup %896  ;;  %902 = vrcp.f32 %v401_v31 }
 0x2d8   :  { %v899_v33 = vpop.eup %898  ;;  %v404_v25 = vadd.f32 1.0, %v897_v32 }
 0x2d9   :  { %v403_v36 = vadd.f32 1.0, %v899_v33 }
 0x2db   :  { %904 = vrcp.f32 %v403_v36 }
 0x2dc   :  { %906 = vrcp.f32 %v404_v25 }
 0x2e0   :  { %v901_v37 = vpop.eup %900 }
 0x2e1   :  { %v903_v38 = vpop.eup %902  ;;  %v414_v39 = vmul.f32 %v901_v37, %v362_v59 }
 0x2e2   :  { %v413_v40 = vmul.f32 %v903_v38, %v362_v59 }
 0x2e3   :  { %434 = vrot.lane.b32.xlu1 %v414_v39, %s963_s2 }
 0x2e4   :  { %432 = vrot.lane.b32.xlu0 %v413_v40, %s963_s2 }
 0x2e5   :  { %v905_v41 = vpop.eup %904 }
 0x2e6   :  { %v415_v42 = vmul.f32 %v905_v41, %v366_v60  ;;  %v907_v43 = vpop.eup %906 }
 0x2e7   :  { %v416_v44 = vmul.f32 %v907_v43, %v366_v60 }
 0x2e8   :  { %436 = vrot.lane.b32.xlu1 %v415_v42, %s963_s2 }
 0x2ec   :  { %438 = vrot.lane.b32.xlu1 %v416_v44, %s963_s2 }
 0x355   :  { %v435_v35 = vpop.permute.xlu1 %434 }
 0x356   :  { %v433_v45 = vpop.permute.xlu0 %432 }
 0x357   :  { %839 = vmatprep.mubr.msk.f32.mxu0 %vm47_vm0, %v433_v45 }
 0x358   :  { %840 = vmatmul.mubr.msk.f32.vlgmr.msra.gmra.mrb[0].mxu0 %vm47_vm0, %v435_v35 }
 0x35a   :  { %v437_v46 = vpop.permute.xlu1 %436 }
 0x35b   :  { %842 = vmatprep.mubr.msk.f32.mxu0 %vm47_vm0, %v437_v46 }
 0x35e   :  { %v439_v47 = vpop.permute.xlu1 %438 }
 0x35f   :  { %843 = vmatmul.mubr.msk.f32.gmra.mrb[2].mxu0 %vm47_vm0, %v439_v47 }
 0x42b   :  { %v841_v52 = vpop.f32.mrb[0].mxu0 }
 0x42c   :  { %v514_v53 = vpop.f32.mrb[1].mxu0  ;;  %v520_v54 = vadd.f32 %v841_v52, %v780_v49 }
 0x42d   :  { %v515_v55 = vadd.f32 %v780_v49, %v514_v53 }
 0x42e   :  { %v534_v59 = vadd.f32 %v520_v54, %v1034_v2  ;;  %v574_v2 = vsub.s32 %v571_v63, %v1133_v48 }
 0x42f   :  { %v533_v60 = vadd.f32 %v515_v55, %v1024_v0 }
 0x430   :  { %v603_v7 = vcombine.high %v534_v59, %v961_v34  ;;  %v610_v0 = vrot.slane %v534_v59, %v1155_v62 }
 0x431   :  { %v537_v9 = vcombine.high %v533_v60, %v961_v34  ;;  %v544_v13 = vrot.slane %v533_v60, %v1155_v62 }
 0x432   :  { %v844_v61 = vpop.f32.mrb[2].mxu0 }
 0x433   :  { %v530_v3 = vadd.f32 %v844_v61, %v780_v49  ;;  %v524_v4 = vpop.f32.mrb[3].mxu0  ;;  %v551_v48 = vrot.slane %v537_v9, %v1155_v62 }
 0x434   :  { %v525_v6 = vadd.f32 %v780_v49, %v524_v4 }
 0x435   :  { %v536_v8 = vadd.f32 %v530_v3, %v1043_v5  ;;  %v617_v5 = vrot.slane %v603_v7, %v1155_v62 }
 0x436   :  { %v535_v10 = vadd.f32 %v525_v6, %v1029_v1 }
 0x437   :  { %v618_v11 = vcombine.high %v536_v8, %v961_v34  ;;  %v625_v12 = vrot.slane %v536_v8, %v1155_v62 }
 0x438   :  { %v552_v14 = vcombine.high %v535_v10, %v961_v34  ;;  %v559_v15 = vrot.slane %v535_v10, %v1155_v62 }
 0x439   :  { %v632_v18 = vrot.slane %v618_v11, %v1155_v62  ;;  %v633_v19 = vcombine.low %v610_v0, %v625_v12  ;;  %v634_v1 = vcombine.high %v610_v0, %v625_v12 }
 0x43a   :  { %v566_v16 = vrot.slane %v552_v14, %v1155_v62  ;;  %v567_v20 = vcombine.low %v544_v13, %v559_v15  ;;  %v568_v21 = vcombine.high %v544_v13, %v559_v15 }
 0x43b   :  { %v648_v22 = vrot.slane %v634_v1, %v574_v2  ;;  %v650_v23 = vcombine.high %v617_v5, %v632_v18  ;;  %v641_v26 = vrot.slane %v633_v19, %v574_v2  ;;  %v649_v27 = vcombine.low %v617_v5, %v632_v18 }
 0x43c   :  { %v582_v24 = vrot.slane %v568_v21, %v574_v2  ;;  %v584_v28 = vcombine.high %v551_v48, %v566_v16  ;;  %v575_v29 = vrot.slane %v567_v20, %v574_v2  ;;  %v583_v17 = vcombine.low %v551_v48, %v566_v16 }
 0x43d   :  { %698 = vrot.lane.b32.xlu0 %v648_v22, %s966_s4  ;;  %v664_v30 = vrot.slane %v650_v23, %v574_v2  ;;  %v657_v31 = vrot.slane %v649_v27, %v574_v2  ;;  %v665_v25 = vcombine.high %v641_v26, %v961_v34  ;;  %v666_v41 = vcombine.high %v648_v22, %v961_v34 }
 0x43e   :  { %v598_v32 = vrot.slane %v584_v28, %v574_v2  ;;  %v591_v33 = vrot.slane %v583_v17, %v574_v2  ;;  %v599_v37 = vcombine.high %v575_v29, %v961_v34  ;;  %v600_v39 = vcombine.high %v582_v24, %v961_v34 }
 0x43f   :  { %710 = vrot.lane.b32.xlu1 %v664_v30, %s966_s4  ;;  %v667_v36 = vcombine.high %v657_v31, %v961_v34  ;;  %v668_v42 = vcombine.high %v664_v30, %v961_v34 }
 0x440   :  { %v601_v38 = vcombine.high %v591_v33, %v961_v34  ;;  %v602_v40 = vcombine.high %v598_v32, %v961_v34 }
 0x441   :  { %674 = vrot.lane.b32.xlu0 %v582_v24, %s966_s4 }
 0x443   :  { %686 = vrot.lane.b32.xlu1 %v598_v32, %s966_s4 }
 0x445   :  { %694 = vrot.lane.b32.xlu0 %v665_v25, %s967_s3 }
 0x447   :  { %706 = vrot.lane.b32.xlu1 %v667_v36, %s967_s3 }
 0x449   :  { %670 = vrot.lane.b32.xlu0 %v599_v37, %s967_s3 }
 0x44b   :  { %682 = vrot.lane.b32.xlu1 %v601_v38, %s967_s3 }
 0x44d   :  { %678 = vrot.lane.b32.xlu0 %v600_v39, %s963_s2 }
 0x44f   :  { %690 = vrot.lane.b32.xlu1 %v602_v40, %s963_s2 }
 0x451   :  { %702 = vrot.lane.b32.xlu0 %v666_v41, %s963_s2 }
 0x453   :  { %714 = vrot.lane.b32.xlu1 %v668_v42, %s963_s2 }
 0x4af   :  { %v699_v43 = vpop.permute.xlu0 %698 }
 0x4b1   :  { %v711_v44 = vpop.permute.xlu1 %710 }
 0x4b3   :  { %v675_v35 = vpop.permute.xlu0 %674 }
 0x4b5   :  { %v687_v45 = vpop.permute.xlu1 %686 }
 0x4b7   :  { %v695_v46 = vpop.permute.xlu0 %694 }
 0x4b8   :  { %v725_v34 = vsel %vm47_vm0, %v641_v26, %v695_v46 }
 0x4b9   :  { %v707_v47 = vpop.permute.xlu1 %706  ;;  %v726_v63 = vsel %vm718_vm4, %v725_v34, %v699_v43 }
 0x4ba   :  { %v728_v56 = vsel %vm47_vm0, %v657_v31, %v707_v47 }
 0x4bb   :  { %v671_v49 = vpop.permute.xlu0 %670  ;;  %v729_v3 = vsel %vm718_vm4, %v728_v56, %v711_v44 }
 0x4bc   :  { %v717_v53 = vsel %vm47_vm0, %v575_v29, %v671_v49 }
 0x4bd   :  { %v683_v50 = vpop.permute.xlu1 %682  ;;  %v719_v58 = vsel %vm718_vm4, %v717_v53, %v675_v35 }
 0x4be   :  { %v722_v51 = vsel %vm47_vm0, %v591_v33, %v683_v50 }
 0x4bf   :  { %v679_v52 = vpop.permute.xlu0 %678  ;;  %v723_v54 = vsel %vm718_vm4, %v722_v51, %v687_v45 }
 0x4c0   :  { %v721_v60 = vsel %vm720_vm5, %v719_v58, %v679_v52 }
 0x4c1   :  { %v691_v55 = vpop.permute.xlu1 %690 }
 0x4c2   :  { %v724_v57 = vsel %vm720_vm5, %v723_v54, %v691_v55 }
 0x4c3   :  { %v703_v59 = vpop.permute.xlu0 %702  ;;  %v735_v61 = vcombine.low %v721_v60, %v724_v57 }
 0x4c4   :  { %v727_v6 = vsel %vm720_vm5, %v726_v63, %v703_v59 }
 0x4c5   :  { %v715_v4 = vpop.permute.xlu1 %714  ;;  %v743_v9 = vrot.slane %v735_v61, %v1155_v62 }
 0x4c6   :  { %v730_v7 = vsel %vm720_vm5, %v729_v3, %v715_v4 }
 0x4c7   :  { %v736_v8 = vcombine.low %v727_v6, %v730_v7 }
 0x4c9   :  { %v750_v10 = vrot.slane %v736_v8, %v1155_v62 }
 0x4cb   :  { %v751_v2 = vcombine.low %v743_v9, %v750_v10 }
 0x4cd   :  { %753 = vst [vmem:[#allocation5] sm:$0xff] %v751_v2 }
 0x4ce   :  { %941 = shalt.err (!%p938_p12)
}
 0x4cf   :  { %s942_s0 = scalar_lea.hbm %s1209_s7, 128 }
 0x4d0   :  { %p943_p13 = scmp.ne.s32.totalorder %s1209_s7, %s942_s0  ;;  %p946_p0 = scmp.lt.u32.totalorder %s942_s0, %s1209_s7 }
 0x4d2   :  { %p948_p1 = pnand %p946_p0, %p943_p13 }
 0x4d4   :  { %951 = shalt.err (!%p948_p1)
}
 0x4d5   :  { %763 = dma.vmem_to_hbm [thread:$0]  %s761_s22, 128, %s1209_s7, [#allocation4]  }
 0x4d6   :  { %954 = dma.done.wait [#allocation4], 128  }
 0x4d7   :  { %955 = vsyncadd [#allocation4], 4294967168 }
 0x4d8   :  { %767 = vsyncpa [#allocation3], 1 }
 0x4d9   :  { %768 = vsyncpa [#allocation4], 1 }

</bundles_post_ra>
